<compile_context>
chip_gen: v5e
topology: v5e:2x2
jax: 0.10.0
libtpu: 0.0.40
codegen_flags: <defaults>
</compile_context>

<pallas_src>
import functools
import math

import jax
import jax.numpy as jnp
from jax.experimental import pallas as pl
from jax.experimental.pallas import tpu as pltpu


# --------------------------------------------------------------------------- #
# Kernels
# --------------------------------------------------------------------------- #
def _fold_lanes(acc, c, cp, axis):
    """Butterfly-sum the lp = cp//c lane groups (lanes l and l +- k*c hold the
    same channel) so every lane ends up with its channel's full spatial sum.
    lp is a power of two, so log2(lp) roll+add steps (XLU, cheap)."""
    shift = c
    while shift < cp:
        acc = acc + pltpu.roll(acc, shift=shift, axis=axis)
        shift *= 2
    return acc


def _grn_fused_kernel(x_ref, gamma_ref, beta_ref, o_ref, *, c, cp):
    # x_ref / o_ref : (b_sub, r, cp)   gamma_ref / beta_ref : (1, cp) f32
    xf = x_ref[...].astype(jnp.float32)
    acc = jnp.sum(xf * xf, axis=1)                            # (b_sub, cp)
    acc = _fold_lanes(acc, c, cp, axis=1)                     # channel sums, lane-replicated
    gx = jnp.sqrt(acc)                                        # (b_sub, cp)
    gx_mean = jnp.mean(gx, axis=1, keepdims=True)             # (b_sub, 1) == channel mean
    # approx=False: exact reciprocal; runs once per block, tolerance > speed.
    nx = gx * pl.reciprocal(gx_mean + 1e-6, approx=False)     # (b_sub, cp)
    scale = (gamma_ref[...] * nx + 1.0)[:, None, :]           # (b_sub, 1, cp)
    bias = beta_ref[...][None, :, :]                          # (1, 1, cp)
    o_ref[...] = (xf * scale + bias).astype(o_ref.dtype)


def _grn_two_pass_kernel(x_ref, gamma_ref, beta_ref, o_ref, sq_ref, scale_ref,
                         *, c, cp, tile_r):
    # x_ref / o_ref : (tile_r, cp)   (batch dim squeezed)
    # gamma_ref / beta_ref : (1, cp) f32
    # sq_ref : (8, cp) f32 scratch, scale_ref : (1, cp) f32 scratch
    p = pl.program_id(1)   # 0 = reduce pass, 1 = apply pass
    t = pl.program_id(2)   # spatial row-tile index

    # ----- pass 0: accumulate packed per-lane sum of squares (f32) -----------
    @pl.when(jnp.logical_and(p == 0, t == 0))
    def _():
        sq_ref[...] = jnp.zeros_like(sq_ref)

    @pl.when(p == 0)
    def _():
        xf = x_ref[...].astype(jnp.float32)
        sq = xf * xf
        # Pure VALU adds in the hot loop; the 8->1 sublane fold (XLU) happens
        # once in the finalize below.
        sq_ref[...] += jnp.sum(sq.reshape(tile_r // 8, 8, cp), axis=0)

    # ----- pass 1, first tile: finalize gx / nx / scale once per batch -------
    @pl.when(jnp.logical_and(p == 1, t == 0))
    def _():
        acc = jnp.sum(sq_ref[...], axis=0, keepdims=True)      # (1, cp)
        acc = _fold_lanes(acc, c, cp, axis=1)
        gx = jnp.sqrt(acc)
        gx_mean = jnp.mean(gx, axis=1, keepdims=True)          # (1, 1)
        nx = gx * pl.reciprocal(gx_mean + 1e-6, approx=False)
        scale_ref[...] = gamma_ref[...] * nx + 1.0             # y = x*scale + beta

    # ----- pass 1: apply (f32 math, single cast on store) --------------------
    @pl.when(p == 1)
    def _():
        xf = x_ref[...].astype(jnp.float32)
        o_ref[...] = (xf * scale_ref[...] + beta_ref[...]).astype(o_ref.dtype)


# --------------------------------------------------------------------------- #
# Wrapper
# --------------------------------------------------------------------------- #
def _vmem_budgets():
    """Generation-aware (vmem_limit_bytes, max_block_bytes)."""
    estimates = []
    try:
        info = pltpu.get_tpu_info()
        for attr in ("vmem_capacity_bytes", "vmem_bytes", "vmem_size_bytes"):
            v = getattr(info, attr, None)
            if v:
                estimates.append(int(v))
                break
    except Exception:
        pass
    try:
        kind = jax.devices()[0].device_kind.lower()
    except Exception:
        kind = ""
    # v5*/v6* have 128 MiB VMEM per TensorCore; anything else (incl. v7x with
    # 64 MiB/TC, or unknown) is treated conservatively.
    estimates.append((128 << 20) if ("v5" in kind or "v6" in kind) else (64 << 20))
    phys = min(estimates)

    vmem_limit = max(32 << 20, min((phys * 3) // 4, 100 << 20))
    # Per step: double-buffered in + out (~4x block in x dtype) plus f32 temps
    # (~2-3x block) must fit under vmem_limit with headroom.
    max_block_bytes = max(vmem_limit // 7, 1 << 20)
    return vmem_limit, max_block_bytes


def grn(x: jax.Array, gamma: jax.Array, beta: jax.Array,
        *, max_block_bytes: int | None = None,
        vmem_limit_bytes: int | None = None) -> jax.Array:
    """x: [N, H, W, C] (NHWC). gamma, beta: [C] (or broadcastable to it)."""
    n, h, w, c = x.shape
    hw = h * w
    out_dtype = x.dtype

    auto_limit, auto_block = _vmem_budgets()
    vmem_limit = int(vmem_limit_bytes) if vmem_limit_bytes else auto_limit
    block_budget = int(max_block_bytes) if max_block_bytes else auto_block

    # Lane packing so every tile's last dim is a multiple of 128.
    lp = 128 // math.gcd(c, 128)
    assert lp & (lp - 1) == 0, "lp must be a power of two (roll butterfly)"
    cp = c * lp
    r = -(-hw // lp)                         # packed spatial rows per batch

    elem_bytes = max(x.dtype.itemsize, 4)    # budget in f32-equivalent bytes
    slab_bytes = r * cp * elem_bytes         # one batch element, fully resident

    xr = x.reshape(n, hw, c)
    gamma_p = jnp.tile(gamma.reshape(-1).astype(jnp.float32), lp).reshape(1, cp)
    beta_p = jnp.tile(beta.reshape(-1).astype(jnp.float32), lp).reshape(1, cp)

    fused = slab_bytes <= block_budget
    if fused:
        # Whole per-batch slab resident: x read from HBM exactly once.
        r_pad = r
        # Pack several small batch elements per block (target ~1 MiB DMA steps).
        target = 1 << 20
        cap = max(1, min(n, block_budget // slab_bytes, max(1, target // slab_bytes)))
        b_sub = 1
        for d in range(min(n, cap), 0, -1):
            if n % d == 0:
                b_sub = d
                break
    else:
        bytes_per_row = cp * elem_bytes
        tile_r = max(8, (block_budget // bytes_per_row) // 8 * 8)
        tile_r = min(tile_r, -(-r // 8) * 8)
        r_pad = -(-r // tile_r) * tile_r
        t_steps = r_pad // tile_r

    # Zero-pad the spatial axis (zeros are exact for sum(x^2); padded rows are
    # sliced off after the kernel).
    hw_pad = r_pad * lp
    if hw_pad != hw:
        xr = jnp.pad(xr, ((0, 0), (0, hw_pad - hw), (0, 0)))
    xp = xr.reshape(n, r_pad, cp)

    if fused:
        kernel = functools.partial(_grn_fused_kernel, c=c, cp=cp)
        out = pl.pallas_call(
            kernel,
            out_shape=jax.ShapeDtypeStruct((n, r_pad, cp), out_dtype),
            grid_spec=pltpu.PrefetchScalarGridSpec(
                num_scalar_prefetch=0,
                grid=(n // b_sub,),
                in_specs=[
                    pl.BlockSpec((b_sub, r_pad, cp), lambda i: (i, 0, 0)),
                    pl.BlockSpec((1, cp), lambda i: (0, 0)),
                    pl.BlockSpec((1, cp), lambda i: (0, 0)),
                ],
                out_specs=pl.BlockSpec((b_sub, r_pad, cp), lambda i: (i, 0, 0)),
            ),
            compiler_params=pltpu.CompilerParams(
                dimension_semantics=("parallel",),
                vmem_limit_bytes=vmem_limit,
            ),
        )(xp, gamma_p, beta_p)
    else:
        kernel = functools.partial(_grn_two_pass_kernel, c=c, cp=cp, tile_r=tile_r)
        out = pl.pallas_call(
            kernel,
            out_shape=jax.ShapeDtypeStruct((n, r_pad, cp), out_dtype),
            grid_spec=pltpu.PrefetchScalarGridSpec(
                num_scalar_prefetch=0,
                grid=(n, 2, t_steps),
                in_specs=[
                    # batch dim squeezed -> kernel sees 2D (tile_r, cp) tiles
                    pl.BlockSpec((None, tile_r, cp), lambda b, p, t: (b, t, 0)),
                    pl.BlockSpec((1, cp), lambda b, p, t: (0, 0)),
                    pl.BlockSpec((1, cp), lambda b, p, t: (0, 0)),
                ],
                # During pass 0 the output index stays pinned at (b, 0) so the
                # never-written buffer is not flushed with garbage after the
                # real write; pass 1 walks the real tiles.
                out_specs=pl.BlockSpec((None, tile_r, cp),
                                       lambda b, p, t: (b, p * t, 0)),
                scratch_shapes=[
                    pltpu.VMEM((8, cp), jnp.float32),   # per-sublane sum(x^2)
                    pltpu.VMEM((1, cp), jnp.float32),   # scale = gamma*nx + 1
                ],
            ),
            compiler_params=pltpu.CompilerParams(
                dimension_semantics=("parallel", "arbitrary", "arbitrary"),
                vmem_limit_bytes=vmem_limit,
            ),
        )(xp, gamma_p, beta_p)

    out = out.reshape(n, hw_pad, c)[:, :hw, :]
    return out.reshape(n, h, w, c)


# --------------------------------------------------------------------------- #
# Reference + tests
# --------------------------------------------------------------------------- #
def grn_reference(x, gamma, beta):
    xf = x.astype(jnp.float32)
    gx = jnp.sqrt(jnp.sum(xf * xf, axis=(1, 2), keepdims=True))
    nx = gx / (jnp.mean(gx, axis=-1, keepdims=True) + 1e-6)
    g = gamma.reshape(1, 1, 1, -1).astype(jnp.float32)
    b = beta.reshape(1, 1, 1, -1).astype(jnp.float32)
    return (g * (xf * nx) + b + xf).astype(x.dtype)


def _check(x, gamma, beta, atol=1e-4, rtol=1e-4, **kw):
    out = jax.block_until_ready(grn(x, gamma, beta, **kw))
    ref = grn_reference(x, gamma, beta)
    assert out.shape == x.shape
    assert out.dtype == x.dtype
    ok = jnp.allclose(out.astype(jnp.float32), ref.astype(jnp.float32),
                      atol=atol, rtol=rtol)
    assert ok, "mismatch vs reference"
    return out


if __name__ == "__main__":
    key = jax.random.PRNGKey(0)
    k_x, k_g, k_b = jax.random.split(key, 3)

    # Main config (channels-last GRN inside a ConvNeXt-V2 block).
    N, H, W, C = 2, 16, 16, 32
    x = jax.random.normal(k_x, (N, H, W, C), dtype=jnp.float32)
    # Module __init__ uses zeros for gamma/beta; use small non-zero values so
    # the normalization path is actually exercised.
    gamma = 0.1 * jax.random.normal(k_g, (C,), dtype=jnp.float32)
    beta = 0.1 * jax.random.normal(k_b, (C,), dtype=jnp.float32)

    _check(x, gamma, beta)                                    # fused, lane-packed (lp=4), b_sub=2
    _check(x, gamma, beta, max_block_bytes=16 * 1024)         # force two-pass tiling (T>1)

    # Already lane-dense channel count (lp=1), fused path.
    C2 = 128
    x2 = jax.random.normal(k_x, (1, 8, 8, C2), dtype=jnp.float32)
    g2 = 0.1 * jax.random.normal(k_g, (C2,), dtype=jnp.float32)
    b2 = 0.1 * jax.random.normal(k_b, (C2,), dtype=jnp.float32)
    _check(x2, g2, b2)

    # hw not a multiple of lp -> zero-pad path (fused and two-pass).
    C3 = 96
    x3 = jax.random.normal(k_x, (2, 7, 7, C3), dtype=jnp.float32)
    g3 = 0.1 * jax.random.normal(k_g, (C3,), dtype=jnp.float32)
    b3 = 0.1 * jax.random.normal(k_b, (C3,), dtype=jnp.float32)
    _check(x3, g3, b3)                                        # fused with padding (lp=4)
    _check(x3, g3, b3, max_block_bytes=8 * 1024)              # two-pass + ragged row padding

    # bf16 (typical ConvNeXt-V2 stage shape, small).
    C4 = 384
    x4 = jax.random.normal(k_x, (2, 14, 14, C4), dtype=jnp.bfloat16)
    g4 = (0.1 * jax.random.normal(k_g, (C4,), dtype=jnp.float32)).astype(jnp.bfloat16)
    b4 = (0.1 * jax.random.normal(k_b, (C4,), dtype=jnp.float32)).astype(jnp.bfloat16)
    _check(x4, g4, b4, atol=5e-2, rtol=5e-2)

    print("KERNEL_OK")
</pallas_src>

<mosaic_0001>
module attributes {stable_mosaic.version = 11 : i64} {
  func.func @_grn_fused_kernel(%arg0: i32, %arg1: memref<2x64x128xf32, #tpu.memory_space<vmem>>, %arg2: memref<1x128xf32, #tpu.memory_space<vmem>>, %arg3: memref<1x128xf32, #tpu.memory_space<vmem>>, %arg4: memref<2x64x128xf32, #tpu.memory_space<vmem>>) attributes {dimension_semantics = [#tpu.dimension_semantics<parallel>], iteration_bounds = array<i64: 1>, scalar_prefetch = 0 : i64, scratch_operands = 0 : i64, tpu.core_type = #tpu.core_type<tc>, window_params = [{transform_indices = @transform_0, window_bounds = array<i64: 2, 64, 128>}, {pipeline_mode = #tpu.pipeline_mode<synchronous>, transform_indices = @transform_1, window_bounds = array<i64: 1, 128>}, {pipeline_mode = #tpu.pipeline_mode<synchronous>, transform_indices = @transform_2, window_bounds = array<i64: 1, 128>}, {transform_indices = @transform_3, window_bounds = array<i64: 2, 64, 128>}]} {
    %c0 = arith.constant 0 : index
    %c0_0 = arith.constant 0 : index
    %c0_1 = arith.constant 0 : index
    %0 = vector.load %arg1[%c0, %c0_0, %c0_1] : memref<2x64x128xf32, #tpu.memory_space<vmem>>, vector<2x64x128xf32>
    %1 = arith.mulf %0, %0 : vector<2x64x128xf32>
    %cst = arith.constant dense<0.000000e+00> : vector<2x128xf32>
    %2 = vector.multi_reduction <add>, %1, %cst [1] : vector<2x64x128xf32> to vector<2x128xf32>
    %c32_i32 = arith.constant 32 : i32
    %3 = tpu.dynamic_rotate %2 by %c32_i32 dim 1 : vector<2x128xf32>, i32 -> vector<2x128xf32>
    %4 = arith.addf %2, %3 : vector<2x128xf32>
    %c64_i32 = arith.constant 64 : i32
    %5 = tpu.dynamic_rotate %4 by %c64_i32 dim 1 : vector<2x128xf32>, i32 -> vector<2x128xf32>
    %6 = arith.addf %4, %5 : vector<2x128xf32>
    %7 = math.sqrt %6 : vector<2x128xf32>
    %cst_2 = arith.constant dense<0.000000e+00> : vector<2xf32>
    %8 = vector.multi_reduction <add>, %7, %cst_2 [1] : vector<2x128xf32> to vector<2xf32>
    %9 = vector.shape_cast %8 : vector<2xf32> to vector<2x1xf32>
    %cst_3 = arith.constant 1.280000e+02 : f32
    %10 = vector.broadcast %cst_3 : f32 to vector<2x1xf32>
    %11 = arith.divf %9, %10 : vector<2x1xf32>
    %cst_4 = arith.constant 9.99999997E-7 : f32
    %12 = vector.broadcast %cst_4 : f32 to vector<2x1xf32>
    %13 = arith.addf %11, %12 : vector<2x1xf32>
    %14 = tpu.reciprocal %13 : vector<2x1xf32> -> vector<2x1xf32>
    %15 = vector.broadcast %14 : vector<2x1xf32> to vector<2x128xf32>
    %16 = arith.mulf %7, %15 : vector<2x128xf32>
    %c0_5 = arith.constant 0 : index
    %c0_6 = arith.constant 0 : index
    %17 = vector.load %arg2[%c0_5, %c0_6] : memref<1x128xf32, #tpu.memory_space<vmem>>, vector<1x128xf32>
    %18 = vector.broadcast %17 : vector<1x128xf32> to vector<2x128xf32>
    %19 = arith.mulf %18, %16 : vector<2x128xf32>
    %cst_7 = arith.constant 1.000000e+00 : f32
    %20 = vector.broadcast %cst_7 : f32 to vector<2x128xf32>
    %21 = arith.addf %19, %20 : vector<2x128xf32>
    %22 = vector.shape_cast %21 : vector<2x128xf32> to vector<2x1x128xf32>
    %c0_8 = arith.constant 0 : index
    %c0_9 = arith.constant 0 : index
    %23 = vector.load %arg3[%c0_8, %c0_9] : memref<1x128xf32, #tpu.memory_space<vmem>>, vector<1x128xf32>
    %24 = vector.shape_cast %23 : vector<1x128xf32> to vector<1x1x128xf32>
    %25 = vector.broadcast %22 : vector<2x1x128xf32> to vector<2x64x128xf32>
    %26 = arith.mulf %0, %25 : vector<2x64x128xf32>
    %27 = vector.broadcast %24 : vector<1x1x128xf32> to vector<2x64x128xf32>
    %28 = arith.addf %26, %27 : vector<2x64x128xf32>
    %c0_10 = arith.constant 0 : index
    %c0_11 = arith.constant 0 : index
    %c0_12 = arith.constant 0 : index
    %29 = vector.load %arg4[%c0_10, %c0_11, %c0_12] : memref<2x64x128xf32, #tpu.memory_space<vmem>>, vector<2x64x128xf32>
    tpu.vector_store %arg4[%c0_10, %c0_11, %c0_12], %28 {strides = array<i32>} : memref<2x64x128xf32, #tpu.memory_space<vmem>>, vector<2x64x128xf32>,
    return
  }
  func.func @transform_0(%arg0: i32) -> (i32, i32, i32) {
    %c0_i32 = arith.constant 0 : i32
    %c0_i32_0 = arith.constant 0 : i32
    %c0_i32_1 = arith.constant 0 : i32
    return %arg0, %c0_i32, %c0_i32_0 : i32, i32, i32
  }
  func.func @transform_1(%arg0: i32) -> (i32, i32) {
    %c0_i32 = arith.constant 0 : i32
    %c0_i32_0 = arith.constant 0 : i32
    %c0_i32_1 = arith.constant 0 : i32
    return %c0_i32, %c0_i32_0 : i32, i32
  }
  func.func @transform_2(%arg0: i32) -> (i32, i32) {
    %c0_i32 = arith.constant 0 : i32
    %c0_i32_0 = arith.constant 0 : i32
    %c0_i32_1 = arith.constant 0 : i32
    return %c0_i32, %c0_i32_0 : i32, i32
  }
  func.func @transform_3(%arg0: i32) -> (i32, i32, i32) {
    %c0_i32 = arith.constant 0 : i32
    %c0_i32_0 = arith.constant 0 : i32
    %c0_i32_1 = arith.constant 0 : i32
    return %arg0, %c0_i32, %c0_i32_0 : i32, i32, i32
  }
}

</mosaic_0001>

<bundles_post_ra>
// kernel: tpu_custom_call.1
= control target key start
LH: loop header
LB: loop body
LE: loop exit
PB: predicated region body
PF: predicated region fallthrough
CT: control target
= control target key end

     0   :  { %8 = vsyncpa [#allocation3], 0  ;;  %s506_s0 = inlined_call_operand.hbm [shape: f32[2,64,128], index: 0, kind: input, shape index: {}]   ;;  %s507_s1 = inlined_call_operand.hbm [shape: f32[1,128], index: 1, kind: input, shape index: {}]   ;;  %s508_s2 = inlined_call_operand.vmem [shape: f32[1,128], index: 2, kind: input, shape index: {}]   ;;  %s509_s3 = inlined_call_operand.hbm [shape: f32[2,64,128], index: 3, kind: output, shape index: {}]  }
   0x1   :  { %9 = vsyncpa [#allocation6], 0 }
   0x2   :  { %10 = vsyncpa [#allocation4], 0  ;;  %s15_s14 = sshll.u32 %s506_s0, 4  ;;  %s376_s15 = smov [#allocation2]   ;;  %s16_s14 = int_to_ptr.hbm [resolvable:$true] %s15_s14 }
   0x3   :  { %s17_s16 = sshll.u32 %s376_s15, 4  ;;  %s29_s19 = sshll.u32 %s507_s1, 4  ;;  %s18_s16 = int_to_ptr.vmem [resolvable:$true] %s17_s16  ;;  %s30_s19 = int_to_ptr.hbm [resolvable:$true] %s29_s19 }
   0x4   :  { %s377_s20 = smov 128   ;;  %s378_s21 = smov 8  }
   0x5   :  { %23 = dma.hbm_to_vmem [thread:$0]  %s16_s14, 2048, %s18_s16, [#allocation3], %s377_s20, %s377_s20, %s378_s21  }
   0x6   :  { %s379_s22 = smov [#allocation5]  }
   0x7   :  { %s31_s23 = sshll.u32 %s379_s22, 4  ;;  %s32_s23 = int_to_ptr.vmem [resolvable:$true] %s31_s23 }
   0x8   :  { %34 = dma.hbm_to_vmem [thread:$0]  %s30_s19, 16, %s32_s23, [#allocation6]  }
   0x9   :  { %370 = dma.done.wait [#allocation3], 2048  }
   0xa   :  { %371 = vsyncadd [#allocation3], 4294965248 }
   0xb   :  { %372 = dma.done.wait [#allocation6], 16  }
   0xc   :  { %373 = vsyncadd [#allocation6], 4294967280  ;;  %v413_v0 = vld [vmem:[#allocation2] sm:$0xff]  ;;  %v415_v1 = vld [vmem:[#allocation2 + $0x8] sm:$0xff]  ;;  %vm105_vm0 = vcmask 1041409   ;;  %s380_s0 = smov 32  }
   0xd   :  { %v417_v2 = vld [vmem:[#allocation2 + $0x10] sm:$0xff]  ;;  %v419_v3 = vld [vmem:[#allocation2 + $0x18] sm:$0xff]  ;;  %v61_v4 = vmul.f32 %v413_v0, %v413_v0  ;;  %v62_v5 = vmul.f32 %v415_v1, %v415_v1  ;;  %v427_v7 = vld [vmem:[#allocation2 + $0x20] sm:$0xff]  ;;  %s381_s1 = smov 64   ;;  %vm158_vm5 = vcmask 1041408   ;;  %s266_s29 = sshll.u32 %s509_s3, 4  ;;  %s267_s29 = int_to_ptr.hbm [resolvable:$true] %s266_s29 }
   0xe   :  { %v63_v6 = vmul.f32 %v417_v2, %v417_v2  ;;  %v429_v8 = vld [vmem:[#allocation2 + $0x40] sm:$0xff]  ;;  %v431_v9 = vld [vmem:[#allocation2 + $0x48] sm:$0xff]  ;;  %v433_v10 = vld [vmem:[#allocation2 + $0x50] sm:$0xff]  ;;  %v64_v12 = vmul.f32 %v419_v3, %v419_v3  ;;  %v65_v19 = vmul.f32 %v427_v7, %v427_v7 }
   0xf   :  { %v435_v11 = vld [vmem:[#allocation2 + $0x58] sm:$0xff]  ;;  %v69_v13 = vmul.f32 %v429_v8, %v429_v8  ;;  %v77_v14 = vadd.f32 %v62_v5, %v61_v4  ;;  %v441_v15 = vld [vmem:[#allocation2 + $0x28] sm:$0xff]  ;;  %v70_v16 = vmul.f32 %v431_v9, %v431_v9  ;;  %v71_v17 = vmul.f32 %v433_v10, %v433_v10  ;;  %v447_v18 = vld [vmem:[#allocation2 + $0x60] sm:$0xff] }
  0x10   :  { %v451_v21 = vld [vmem:[#allocation2 + $0x30] sm:$0xff]  ;;  %v72_v22 = vmul.f32 %v435_v11, %v435_v11  ;;  %v455_v24 = vld [vmem:[#allocation2 + $0x68] sm:$0xff]  ;;  %v66_v25 = vmul.f32 %v441_v15, %v441_v15  ;;  %v459_v27 = vld [vmem:[#allocation2 + $0x38] sm:$0xff]  ;;  %v73_v28 = vmul.f32 %v447_v18, %v447_v18 }
  0x11   :  { %v78_v20 = vadd.f32 %v77_v14, %v63_v6  ;;  %v90_v23 = vadd.f32 %v70_v16, %v69_v13  ;;  %v463_v30 = vld [vmem:[#allocation2 + $0x70] sm:$0xff]  ;;  %v67_v31 = vmul.f32 %v451_v21, %v451_v21  ;;  %v74_v33 = vmul.f32 %v455_v24, %v455_v24  ;;  %v469_v35 = vld [vmem:[#allocation2 + $0x78] sm:$0xff] }
  0x12   :  { %v68_v36 = vmul.f32 %v459_v27, %v459_v27  ;;  %v75_v38 = vmul.f32 %v463_v30, %v463_v30  ;;  %v76_v41 = vmul.f32 %v469_v35, %v469_v35 }
  0x13   :  { %v79_v26 = vadd.f32 %v78_v20, %v64_v12  ;;  %v91_v29 = vadd.f32 %v90_v23, %v71_v17 }
  0x15   :  { %v80_v32 = vadd.f32 %v79_v26, %v65_v19  ;;  %v92_v34 = vadd.f32 %v91_v29, %v72_v22 }
  0x17   :  { %v81_v37 = vadd.f32 %v80_v32, %v66_v25  ;;  %v93_v39 = vadd.f32 %v92_v34, %v73_v28 }
  0x19   :  { %v82_v40 = vadd.f32 %v81_v37, %v67_v31  ;;  %v94_v42 = vadd.f32 %v93_v39, %v74_v33 }
  0x1b   :  { %v83_v43 = vadd.f32 %v82_v40, %v68_v36  ;;  %v95_v44 = vadd.f32 %v94_v42, %v75_v38 }
  0x1d   :  { %v84_v45 = vrot.slane %v83_v43, 4  ;;  %v96_v46 = vadd.f32 %v95_v44, %v76_v41  ;;  %v382_v44 = vmov 128.0  }
  0x1f   :  { %v85_v47 = vadd.f32 %v84_v45, %v83_v43  ;;  %v97_v48 = vrot.slane %v96_v46, 4 }
  0x21   :  { %v86_v49 = vrot.slane %v85_v47, 2  ;;  %v98_v50 = vadd.f32 %v97_v48, %v96_v46 }
  0x23   :  { %v87_v51 = vadd.f32 %v86_v49, %v85_v47  ;;  %v99_v52 = vrot.slane %v98_v50, 2 }
  0x25   :  { %v88_v53 = vrot.slane %v87_v51, 1  ;;  %v100_v54 = vadd.f32 %v99_v52, %v98_v50 }
  0x27   :  { %v89_v55 = vadd.f32 %v88_v53, %v87_v51  ;;  %v101_v56 = vrot.slane %v100_v54, 1 }
  0x29   :  { %v102_v57 = vadd.f32 %v101_v56, %v100_v54 }
  0x2b   :  { %v106_v58 = vsel %vm105_vm0, %v102_v57, %v89_v55 }
  0x2c   :  { %108 = vrot.lane.b32.xlu0 %v106_v58, %s380_s0 }
  0x9e   :  { %v109_v59 = vpop.permute.xlu0 %108 }
  0x9f   :  { %v111_v60 = vrot.slane %v109_v59, 1  ;;  %v114_v62 = vadd.f32 %v109_v59, %v89_v55 }
  0xa1   :  { %v115_v61 = vadd.f32 %v111_v60, %v102_v57 }
  0xa3   :  { %v118_v63 = vrot.slane %v115_v61, 7 }
  0xa5   :  { %v119_v4 = vsel %vm105_vm0, %v118_v63, %v114_v62 }
  0xa6   :  { %121 = vrot.lane.b32.xlu0 %v119_v4, %s381_s1 }
 0x118   :  { %v122_v5 = vpop.permute.xlu0 %121 }
 0x119   :  { %v124_v6 = vrot.slane %v122_v5, 1  ;;  %v127_v12 = vadd.f32 %v122_v5, %v114_v62 }
 0x11b   :  { %v128_v13 = vadd.f32 %v124_v6, %v115_v61  ;;  %290 = vrsqrt.f32 %v127_v12  ;;  %vm136_vm1 = vcmp.eq.f32.partialorder %v127_v12, inf  ;;  %v139_v38 = vand.u32 2147483648, %v127_v12  ;;  %v288_v6 = vld [vmem:[#allocation5] ss:$0 sm:$0xff] }
 0x11c   :  { %vm138_vm4 = vcmp.eq.f32.partialorder %v127_v12, 0.0 }
 0x11d   :  { %292 = vrsqrt.f32 %v128_v13  ;;  %vm148_vm2 = vcmp.eq.f32.partialorder %v128_v13, inf  ;;  %v151_v34 = vand.u32 2147483648, %v128_v13  ;;  %vm150_vm3 = vcmp.eq.f32.partialorder %v128_v13, 0.0 }
 0x11e   :  { %294 = vrcp.f32 %v382_v44 }
 0x121   :  { %v291_v14 = vpop.eup %290 }
 0x122   :  { %v130_v16 = vmul.f32 %v291_v14, %v127_v12 }
 0x123   :  { %v293_v17 = vpop.eup %292 }
 0x124   :  { %v131_v19 = vmul.f32 %v291_v14, %v130_v16  ;;  %v142_v20 = vmul.f32 %v293_v17, %v128_v13  ;;  %v295_v45 = vpop.eup %294 }
 0x125   :  { %v163_v46 = vmul.f32 128.0, %v295_v45  ;;  %vm167_vm6 = vweird.f32 %v295_v45 }
 0x126   :  { %v132_v22 = vmul.f32 0.5, %v131_v19  ;;  %v143_v23 = vmul.f32 %v293_v17, %v142_v20 }
 0x127   :  { %v164_v47 = vsub.f32 1.0, %v163_v46 }
 0x128   :  { %v133_v25 = vsub.f32 1.5, %v132_v22  ;;  %v144_v26 = vmul.f32 0.5, %v143_v23  ;;  %v289_v22 = vld [vmem:[%s508_s2] ss:$0 sm:$0xff]  ;;  %s383_s2 = smov [#allocation7]  }
 0x129   :  { %v165_v48 = vmul.f32 %v295_v45, %v164_v47  ;;  %s264_s26 = sshll.u32 %s383_s2, 4  ;;  %s265_s26 = int_to_ptr.vmem [resolvable:$true] %s264_s26 }
 0x12a   :  { %v134_v28 = vmul.f32 %v291_v14, %v133_v25  ;;  %v145_v29 = vsub.f32 1.5, %v144_v26 }
 0x12b   :  { %v166_v49 = vadd.f32 %v295_v45, %v165_v48 }
 0x12c   :  { %v135_v31 = vmul.f32 %v134_v28, %v127_v12  ;;  %v146_v32 = vmul.f32 %v293_v17, %v145_v29 }
 0x12d   :  { %v168_v50 = vsel %vm167_vm6, %v295_v45, %v166_v49 }
 0x12e   :  { %v147_v33 = vmul.f32 %v146_v32, %v128_v13  ;;  %v137_v36 = vsel %vm136_vm1, %v127_v12, %v135_v31 }
 0x12f   :  { %v140_v41 = vsel %vm138_vm4, %v139_v38, %v137_v36 }
 0x130   :  { %v149_v37 = vsel %vm148_vm2, %v128_v13, %v147_v33 }
 0x131   :  { %v152_v39 = vsel %vm150_vm3, %v151_v34, %v149_v37 }
 0x132   :  { %v155_v40 = vrot.slane %v152_v39, 7 }
 0x134   :  { %v156_v42 = vsel %vm105_vm0, %v155_v40, %v140_v41 }
 0x135   :  { %v159_v43 = vsel %vm158_vm5, %v156_v42, 0.0 }
 0x136   :  { %160 = vadd.xlane.f32.xlu1 %v159_v43 }
 0x1a9   :  { %v161_v51 = vpop.xlane.xlu1 %160 }
 0x1aa   :  { %v169_v52 = vmul.f32 %v168_v50, %v161_v51 }
 0x1ac   :  { %v170_v53 = vadd.f32 1e-06, %v169_v52 }
 0x1ae   :  { %296 = vrcp.f32 %v170_v53  ;;  %v182_v57 = vand.u32 2147483648, %v170_v53  ;;  %v180_v59 = vand.u32 2147483647, %v170_v53  ;;  %vm176_vm8 = vweird.f32 %v170_v53 }
 0x1b0   :  { %v183_v61 = vor.u32 1.1754944e-38, %v182_v57  ;;  %vm181_vm10 = vcmp.eq.f32.partialorder %v180_v59, 8.507059e+37 }
 0x1b4   :  { %v297_v54 = vpop.eup %296 }
 0x1b5   :  { %v172_v55 = vmul.f32 %v297_v54, %v170_v53  ;;  %vm177_vm7 = vweird.f32 %v297_v54 }
 0x1b6   :  { %vm178_vm9 = vmor %vm176_vm8, %vm177_vm7 }
 0x1b7   :  { %v173_v56 = vsub.f32 1.0, %v172_v55 }
 0x1b9   :  { %v174_v58 = vmul.f32 %v297_v54, %v173_v56 }
 0x1bb   :  { %v175_v60 = vadd.f32 %v297_v54, %v174_v58 }
 0x1bd   :  { %v179_v62 = vsel %vm178_vm9, %v297_v54, %v175_v60 }
 0x1be   :  { %v184_v63 = vsel %vm181_vm10, %v183_v61, %v179_v62 }
 0x1bf   :  { %v186_v4 = vrot.slane %v184_v63, 1  ;;  %v189_v12 = vmul.f32 %v184_v63, %v140_v41 }
 0x1c1   :  { %v190_v5 = vmul.f32 %v186_v4, %v152_v39 }
 0x1c3   :  { %v197_v13 = vrot.slane %v190_v5, 7 }
 0x1c5   :  { %v198_v14 = vsel %vm105_vm0, %v197_v13, %v189_v12 }
 0x1c6   :  { %v200_v16 = vmul.f32 %v288_v6, %v198_v14 }
 0x1c8   :  { %v201_v17 = vadd.f32 1.0, %v200_v16 }
 0x1ca   :  { %v203_v19 = vrot.slane %v201_v17, 1  ;;  %v205_v20 = vperm.slane %v201_v17, 0 }
 0x1cc   :  { %v209_v23 = vmul.f32 %v205_v20, %v413_v0  ;;  %v210_v25 = vmul.f32 %v205_v20, %v415_v1  ;;  %v211_v26 = vmul.f32 %v205_v20, %v417_v2  ;;  %v212_v28 = vmul.f32 %v205_v20, %v419_v3 }
 0x1cd   :  { %v206_v29 = vperm.slane %v203_v19, 0  ;;  %v213_v31 = vmul.f32 %v205_v20, %v427_v7  ;;  %v214_v32 = vmul.f32 %v205_v20, %v441_v15  ;;  %v215_v33 = vmul.f32 %v205_v20, %v451_v21 }
 0x1ce   :  { %v228_v34 = vadd.f32 %v289_v22, %v209_v23  ;;  %v229_v36 = vadd.f32 %v289_v22, %v210_v25  ;;  %v230_v37 = vadd.f32 %v289_v22, %v211_v26  ;;  %v216_v38 = vmul.f32 %v205_v20, %v459_v27 }
 0x1cf   :  { %v231_v39 = vadd.f32 %v289_v22, %v212_v28  ;;  %v217_v0 = vmul.f32 %v206_v29, %v429_v8  ;;  %v232_v1 = vadd.f32 %v289_v22, %v213_v31  ;;  %v218_v2 = vmul.f32 %v206_v29, %v431_v9 }
 0x1d0   :  { %244 = vst [vmem:[#allocation7] sm:$0xff] %v228_v34  ;;  %v233_v3 = vadd.f32 %v289_v22, %v214_v32  ;;  %v219_v7 = vmul.f32 %v206_v29, %v433_v10  ;;  %v234_v40 = vadd.f32 %v289_v22, %v215_v33  ;;  %v220_v15 = vmul.f32 %v206_v29, %v435_v11 }
 0x1d1   :  { %245 = vst [vmem:[#allocation7 + $0x8] sm:$0xff] %v229_v36  ;;  %v235_v21 = vadd.f32 %v289_v22, %v216_v38  ;;  %v221_v41 = vmul.f32 %v206_v29, %v447_v18  ;;  %v236_v27 = vadd.f32 %v289_v22, %v217_v0  ;;  %v222_v8 = vmul.f32 %v206_v29, %v455_v24 }
 0x1d2   :  { %246 = vst [vmem:[#allocation7 + $0x10] sm:$0xff] %v230_v37  ;;  %v237_v42 = vadd.f32 %v289_v22, %v218_v2  ;;  %v223_v9 = vmul.f32 %v206_v29, %v463_v30  ;;  %v238_v43 = vadd.f32 %v289_v22, %v219_v7  ;;  %v224_v10 = vmul.f32 %v206_v29, %v469_v35 }
 0x1d3   :  { %247 = vst [vmem:[#allocation7 + $0x18] sm:$0xff] %v231_v39  ;;  %v239_v44 = vadd.f32 %v289_v22, %v220_v15  ;;  %v240_v45 = vadd.f32 %v289_v22, %v221_v41  ;;  %v241_v11 = vadd.f32 %v289_v22, %v222_v8 }
 0x1d4   :  { %248 = vst [vmem:[#allocation7 + $0x20] sm:$0xff] %v232_v1  ;;  %v242_v46 = vadd.f32 %v289_v22, %v223_v9  ;;  %v243_v18 = vadd.f32 %v289_v22, %v224_v10 }
 0x1d5   :  { %249 = vst [vmem:[#allocation7 + $0x28] sm:$0xff] %v233_v3 }
 0x1d6   :  { %250 = vst [vmem:[#allocation7 + $0x30] sm:$0xff] %v234_v40 }
 0x1d7   :  { %251 = vst [vmem:[#allocation7 + $0x38] sm:$0xff] %v235_v21 }
 0x1d8   :  { %252 = vst [vmem:[#allocation7 + $0x40] sm:$0xff] %v236_v27 }
 0x1d9   :  { %253 = vst [vmem:[#allocation7 + $0x48] sm:$0xff] %v237_v42 }
 0x1da   :  { %254 = vst [vmem:[#allocation7 + $0x50] sm:$0xff] %v238_v43 }
 0x1db   :  { %255 = vst [vmem:[#allocation7 + $0x58] sm:$0xff] %v239_v44 }
 0x1dc   :  { %256 = vst [vmem:[#allocation7 + $0x60] sm:$0xff] %v240_v45 }
 0x1dd   :  { %257 = vst [vmem:[#allocation7 + $0x68] sm:$0xff] %v241_v11 }
 0x1de   :  { %258 = vst [vmem:[#allocation7 + $0x70] sm:$0xff] %v242_v46 }
 0x1df   :  { %259 = vst [vmem:[#allocation7 + $0x78] sm:$0xff] %v243_v18 }
 0x1e0   :  { %272 = dma.vmem_to_hbm [thread:$0]  %s265_s26, 2048, %s267_s29, [#allocation4], %s377_s20, %s377_s20, %s378_s21  }
 0x1e1   :  { %374 = dma.done.wait [#allocation4], 2048  }
 0x1e2   :  { %375 = vsyncadd [#allocation4], 4294965248 }
 0x1e3   :  { %277 = vsyncpa [#allocation3], 1 }
 0x1e4   :  { %278 = vsyncpa [#allocation6], 1 }
 0x1e5   :  { %279 = vsyncpa [#allocation4], 1 }

</bundles_post_ra>
